<compile_context>
chip_gen: v7x
topology: tpu7x:2x2x1
jax: 0.10.0
libtpu: 0.0.40
codegen_flags: <defaults>
</compile_context>

<pallas_src>
import functools

import jax
import jax.numpy as jnp
from jax.experimental import pallas as pl
from jax.experimental.pallas import tpu as pltpu


# ---------------------------------------------------------------------------
# Kernels
# ---------------------------------------------------------------------------
def _proj_skip_kernel(x_ref, w_ref, b_ref, new_ref, o_ref):
    # out = relu(x @ W + b + new_X)  -- MXU matmul + fused VPU epilogue.
    acc = jnp.dot(x_ref[...], w_ref[...], preferred_element_type=jnp.float32)
    acc = acc + b_ref[...] + new_ref[...]
    o_ref[...] = jnp.maximum(acc, 0.0).astype(o_ref.dtype)


def _identity_skip_kernel(x_ref, new_ref, o_ref):
    # out = relu(x + new_X)  -- purely mem-bound add + ReLU.
    o_ref[...] = jnp.maximum(x_ref[...] + new_ref[...], 0.0).astype(o_ref.dtype)


# ---------------------------------------------------------------------------
# Tiling helpers
# ---------------------------------------------------------------------------
def _sublane(dtype):
    """Sublane alignment multiple for a dtype: f32 -> 8, bf16 -> 16, int8 -> 32."""
    return max(8, 32 // jnp.dtype(dtype).itemsize)


def _auto_row_tile(n_rows, bytes_per_row, sublane,
                   *, target_bytes=3 << 20, max_rows=16384):
    """Row tile aiming at ~target_bytes of streamed data per grid step.

    Amortizes the ~0.35 us / ~600-cycle per-grid-step overhead (1-4 MiB blocks
    reach ~85% of HBM roofline in tiled-add measurements) while keeping the
    double-buffered VMEM footprint well inside the scoped defaults on
    v5e (16 MiB) / v6e / v7x (32 MiB).
    """
    t = max(sublane, target_bytes // max(bytes_per_row, 1))
    t = min(t, max_rows)
    t = max(sublane, (t // sublane) * sublane)
    if n_rows <= t:
        # Whole row range fits one block: still split it in two (when legal)
        # so a "parallel" grid axis gives v7x's second TensorCore work to do.
        if n_rows >= 2 * sublane:
            return max(sublane, ((n_rows // 2) // sublane) * sublane)
        return n_rows            # full-extent block is always legal
    return t


def _col_tile(input_dim, output_dim, itemsize, *, w_target_bytes=4 << 20):
    """Output-dim tile so one resident weight panel stays ~<= w_target_bytes."""
    if output_dim <= 128 or input_dim * output_dim * itemsize <= w_target_bytes:
        # Whole weight is VMEM-resident (also single-buffered, see below).
        # NOTE: extremely large input_dim with small output_dim would need a
        # K-reduction grid axis + accumulator; not needed for this module's
        # typical GCN-sized layers.
        return output_dim
    t = w_target_bytes // max(input_dim * itemsize, 1)
    t = max(128, (t // 128) * 128)       # last block dim must be 128-multiple
    return min(t, output_dim)


def _pick_lanes(total, cap=512):
    """Widest multiple of 128 (<= cap) that divides `total`; 0 if none."""
    for k in range(cap // 128, 0, -1):
        if total % (k * 128) == 0:
            return k * 128
    return 0


# ---------------------------------------------------------------------------
# Single-buffered (Buffered(1)) support probe for constant-index blocks
# ---------------------------------------------------------------------------
_SINGLE_BUFFER_OK = None


def _probe_kernel(a_ref, c_ref, o_ref):
    o_ref[...] = a_ref[...] + c_ref[...]


def _single_buffer_supported():
    """Probe (once, eagerly) whether pipeline_mode=pl.Buffered(1) lowers here."""
    global _SINGLE_BUFFER_OK
    if _SINGLE_BUFFER_OK is None:
        try:
            a = jnp.zeros((16, 128), jnp.float32)
            c = jnp.zeros((8, 128), jnp.float32)
            out = pl.pallas_call(
                _probe_kernel,
                out_shape=jax.ShapeDtypeStruct((16, 128), jnp.float32),
                grid_spec=pltpu.PrefetchScalarGridSpec(
                    num_scalar_prefetch=0,
                    grid=(2,),
                    in_specs=[
                        pl.BlockSpec((8, 128), lambda i: (i, 0)),
                        pl.BlockSpec((8, 128), lambda i: (0, 0),
                                     pipeline_mode=pl.Buffered(1)),
                    ],
                    out_specs=pl.BlockSpec((8, 128), lambda i: (i, 0)),
                ),
            )(a, c)
            jax.block_until_ready(out)
            _SINGLE_BUFFER_OK = True
        except Exception:   # any construction / lowering failure -> fall back
            _SINGLE_BUFFER_OK = False
    return _SINGLE_BUFFER_OK


def _resident_spec(block_shape, index_map):
    """BlockSpec for a block whose index map is constant across the grid.

    Single-buffered when supported (halves its VMEM footprint and drops the
    redundant buffer rotation); otherwise default double-buffering (it is
    still only DMA'd once since its block index never changes).
    """
    if _single_buffer_supported():
        return pl.BlockSpec(block_shape, index_map, pipeline_mode=pl.Buffered(1))
    return pl.BlockSpec(block_shape, index_map)


def _compiler_params(dim_semantics, vmem_limit_bytes=None):
    # Block sizing above keeps the double-buffered footprint inside the scoped
    # VMEM defaults on v5e/v6e/v7x; pass vmem_limit_bytes explicitly if the
    # tile targets are ever raised past that.
    if vmem_limit_bytes is None:
        return pltpu.CompilerParams(dimension_semantics=dim_semantics)
    return pltpu.CompilerParams(dimension_semantics=dim_semantics,
                                vmem_limit_bytes=vmem_limit_bytes)


# ---------------------------------------------------------------------------
# Wrapper
# ---------------------------------------------------------------------------
def skip_connection(x, new_x, params, input_dim, output_dim, *,
                    vmem_limit_bytes=None):
    """Pallas implementation of Skip_Connection.forward((x, new_x)).

    `new_x` is aliased to the kernel output (input_output_aliases).  For the
    aliasing to actually save an HBM round-trip the caller must donate it
    (e.g. jax.jit(..., donate_argnums=...)); after a donated call its buffer
    holds the output and must not be reused.  Without donation XLA inserts a
    defensive copy (correct, just slower).
    """
    n = x.shape[0]
    dtype = x.dtype
    itemsize = jnp.dtype(dtype).itemsize
    sub = _sublane(dtype)

    if input_dim != output_dim:
        # --- projection path: relu(x @ W + b + new_X) ---------------------
        w, b = params["w"], params["b"]
        tdn = _col_tile(input_dim, output_dim, itemsize)
        n_j = pl.cdiv(output_dim, tdn)
        # Streamed bytes per row of one grid step: x + new_X + out.
        tn = _auto_row_tile(n, (input_dim + 2 * tdn) * itemsize, sub)

        if n_j == 1:
            # Whole weight/bias resident at a fixed block -> single-buffer.
            w_spec = _resident_spec((input_dim, tdn), lambda i, j: (0, j))
            b_spec = _resident_spec((1, tdn), lambda i, j: (0, j))
        else:
            # Weight streams over the output-dim axis -> keep double-buffering.
            w_spec = pl.BlockSpec((input_dim, tdn), lambda i, j: (0, j))
            b_spec = pl.BlockSpec((1, tdn), lambda i, j: (0, j))

        # NOTE: for output_dim < 128 the output stores are masked (vst.msk); a
        # lane-dense in-kernel relayout of the epilogue would be faster but
        # Mosaic reshape support for that pattern is not guaranteed, so we
        # keep the natural (tn, output_dim) store here.
        return pl.pallas_call(
            _proj_skip_kernel,
            out_shape=jax.ShapeDtypeStruct((n, output_dim), dtype),
            grid_spec=pltpu.PrefetchScalarGridSpec(
                num_scalar_prefetch=0,
                grid=(pl.cdiv(n, tn), n_j),
                in_specs=[
                    pl.BlockSpec((tn, input_dim), lambda i, j: (i, 0)),
                    w_spec,
                    b_spec,
                    pl.BlockSpec((tn, tdn), lambda i, j: (i, j)),
                ],
                out_specs=pl.BlockSpec((tn, tdn), lambda i, j: (i, j)),
            ),
            input_output_aliases={3: 0},          # reuse new_X's buffer
            compiler_params=_compiler_params(("parallel", "parallel"),
                                             vmem_limit_bytes),
        )(x, w, b, new_x)

    # --- identity path: relu(x + new_X) ----------------------------------
    total = n * output_dim
    lanes = _pick_lanes(total)
    if lanes:
        # Lane-dense view: flatten to (rows, lanes) so every load/store is a
        # full-width unmasked vector op instead of a masked partial store.
        rows = total // lanes
        x2 = x.reshape(rows, lanes)
        nx2 = new_x.reshape(rows, lanes)
        tr = _auto_row_tile(rows, 3 * lanes * itemsize, sub)
        out = pl.pallas_call(
            _identity_skip_kernel,
            out_shape=jax.ShapeDtypeStruct((rows, lanes), dtype),
            grid_spec=pltpu.PrefetchScalarGridSpec(
                num_scalar_prefetch=0,
                grid=(pl.cdiv(rows, tr),),
                in_specs=[
                    pl.BlockSpec((tr, lanes), lambda i: (i, 0)),
                    pl.BlockSpec((tr, lanes), lambda i: (i, 0)),
                ],
                out_specs=pl.BlockSpec((tr, lanes), lambda i: (i, 0)),
            ),
            input_output_aliases={1: 0},
            compiler_params=_compiler_params(("parallel",), vmem_limit_bytes),
        )(x2, nx2)
        return out.reshape(n, output_dim)

    # Fallback: feature dim not lane-packable; tile rows, full last dim.
    tn = _auto_row_tile(n, 3 * output_dim * itemsize, sub)
    return pl.pallas_call(
        _identity_skip_kernel,
        out_shape=jax.ShapeDtypeStruct((n, output_dim), dtype),
        grid_spec=pltpu.PrefetchScalarGridSpec(
            num_scalar_prefetch=0,
            grid=(pl.cdiv(n, tn),),
            in_specs=[
                pl.BlockSpec((tn, output_dim), lambda i: (i, 0)),
                pl.BlockSpec((tn, output_dim), lambda i: (i, 0)),
            ],
            out_specs=pl.BlockSpec((tn, output_dim), lambda i: (i, 0)),
        ),
        input_output_aliases={1: 0},
        compiler_params=_compiler_params(("parallel",), vmem_limit_bytes),
    )(x, new_x)


def init_params(key, input_dim, output_dim):
    """Deterministic init mimicking nn.Linear(input_dim, output_dim)."""
    if input_dim == output_dim:
        return {}
    kw, kb = jax.random.split(key)
    bound = 1.0 / jnp.sqrt(jnp.float32(input_dim))
    # torch stores (out, in); we use (in, out) so the kernel does x @ W.
    w = jax.random.uniform(kw, (input_dim, output_dim), jnp.float32, -bound, bound)
    b = jax.random.uniform(kb, (1, output_dim), jnp.float32, -bound, bound)
    return {"w": w, "b": b}


# ---------------------------------------------------------------------------
# Demo / correctness check
# ---------------------------------------------------------------------------
if __name__ == "__main__":
    key = jax.random.PRNGKey(0)
    k1, k2, k3, k4, k5, k6, kp = jax.random.split(key, 7)

    # --- Case 1: input_dim != output_dim (Linear projection path) ---------
    N, DIN, DOUT = 256, 32, 16
    x = jax.random.normal(k1, (N, DIN), jnp.float32)
    new_x = jax.random.normal(k2, (N, DOUT), jnp.float32)
    params = init_params(kp, DIN, DOUT)
    ref1 = jnp.maximum(x @ params["w"] + params["b"] + new_x, 0.0)

    # Donate new_x so input_output_aliases actually reuses its HBM buffer.
    proj_fn = jax.jit(
        functools.partial(skip_connection, input_dim=DIN, output_dim=DOUT),
        donate_argnums=(1,),
    )
    out1 = jax.block_until_ready(proj_fn(x, new_x, params))
    del new_x  # donated: its buffer now holds the kernel output
    assert out1.shape == (N, DOUT)
    assert jnp.allclose(out1, ref1, atol=1e-5, rtol=1e-5)

    # --- Case 2: input_dim == output_dim (residual, lane-dense slab) ------
    D = 32
    x2 = jax.random.normal(k3, (N, D), jnp.float32)
    new_x2 = jax.random.normal(k4, (N, D), jnp.float32)
    out2 = jax.block_until_ready(skip_connection(x2, new_x2, {}, D, D))
    ref2 = jnp.maximum(x2 + new_x2, 0.0)
    assert out2.shape == (N, D)
    assert jnp.allclose(out2, ref2, atol=1e-6)

    # --- Case 3: residual fallback (N*D not a multiple of 128) ------------
    N3, D3 = 10, 20
    x3 = jax.random.normal(k5, (N3, D3), jnp.float32)
    new_x3 = jax.random.normal(k6, (N3, D3), jnp.float32)
    out3 = jax.block_until_ready(skip_connection(x3, new_x3, {}, D3, D3))
    ref3 = jnp.maximum(x3 + new_x3, 0.0)
    assert out3.shape == (N3, D3)
    assert jnp.allclose(out3, ref3, atol=1e-6)

    print("KERNEL_OK")
</pallas_src>

<mosaic_0001>
module attributes {stable_mosaic.version = 11 : i64} {
  func.func @_proj_skip_kernel(%arg0: i32, %arg1: i32, %arg2: memref<128x32xf32, #tpu.memory_space<vmem>>, %arg3: memref<32x16xf32, #tpu.memory_space<vmem>>, %arg4: memref<1x16xf32, #tpu.memory_space<vmem>>, %arg5: memref<128x16xf32, #tpu.memory_space<vmem>>, %arg6: memref<128x16xf32, #tpu.memory_space<vmem>>) attributes {dimension_semantics = [#tpu.dimension_semantics<parallel>, #tpu.dimension_semantics<parallel>], iteration_bounds = array<i64: 2, 1>, scalar_prefetch = 0 : i64, scratch_operands = 0 : i64, tpu.core_type = #tpu.core_type<tc>, window_params = [{transform_indices = @transform_0, window_bounds = array<i64: 128, 32>}, {pipeline_mode = #tpu.pipeline_mode<synchronous>, transform_indices = @transform_1, window_bounds = array<i64: 32, 16>}, {pipeline_mode = #tpu.pipeline_mode<synchronous>, transform_indices = @transform_2, window_bounds = array<i64: 1, 16>}, {transform_indices = @transform_3, window_bounds = array<i64: 128, 16>}, {transform_indices = @transform_4, window_bounds = array<i64: 128, 16>}]} {
    %c0 = arith.constant 0 : index
    %c0_0 = arith.constant 0 : index
    %0 = vector.load %arg2[%c0, %c0_0] : memref<128x32xf32, #tpu.memory_space<vmem>>, vector<128x32xf32>
    %c0_1 = arith.constant 0 : index
    %c0_2 = arith.constant 0 : index
    %1 = vector.load %arg3[%c0_1, %c0_2] : memref<32x16xf32, #tpu.memory_space<vmem>>, vector<32x16xf32>
    %cst = arith.constant dense<0.000000e+00> : vector<128x16xf32>
    %2 = tpu.matmul %0, %1, %cst {dimension_numbers = #tpu.dot_dimension_numbers<[1], [0], [0], [1], [0, 0, 1, 1], [], []>} : vector<128x32xf32>, vector<32x16xf32>, vector<128x16xf32> -> vector<128x16xf32>
    %c0_3 = arith.constant 0 : index
    %c0_4 = arith.constant 0 : index
    %3 = vector.load %arg4[%c0_3, %c0_4] : memref<1x16xf32, #tpu.memory_space<vmem>>, vector<1x16xf32>
    %4 = vector.broadcast %3 : vector<1x16xf32> to vector<128x16xf32>
    %5 = arith.addf %2, %4 : vector<128x16xf32>
    %c0_5 = arith.constant 0 : index
    %c0_6 = arith.constant 0 : index
    %6 = vector.load %arg5[%c0_5, %c0_6] : memref<128x16xf32, #tpu.memory_space<vmem>>, vector<128x16xf32>
    %7 = arith.addf %5, %6 : vector<128x16xf32>
    %cst_7 = arith.constant 0.000000e+00 : f32
    %8 = vector.broadcast %cst_7 : f32 to vector<128x16xf32>
    %9 = arith.maximumf %7, %8 : vector<128x16xf32>
    %c0_8 = arith.constant 0 : index
    %c0_9 = arith.constant 0 : index
    %10 = vector.load %arg6[%c0_8, %c0_9] : memref<128x16xf32, #tpu.memory_space<vmem>>, vector<128x16xf32>
    tpu.vector_store %arg6[%c0_8, %c0_9], %9 {strides = array<i32>} : memref<128x16xf32, #tpu.memory_space<vmem>>, vector<128x16xf32>,
    return
  }
  func.func @transform_0(%arg0: i32, %arg1: i32) -> (i32, i32) {
    %c0_i32 = arith.constant 0 : i32
    %c0_i32_0 = arith.constant 0 : i32
    return %arg0, %c0_i32 : i32, i32
  }
  func.func @transform_1(%arg0: i32, %arg1: i32) -> (i32, i32) {
    %c0_i32 = arith.constant 0 : i32
    %c0_i32_0 = arith.constant 0 : i32
    return %c0_i32, %arg1 : i32, i32
  }
  func.func @transform_2(%arg0: i32, %arg1: i32) -> (i32, i32) {
    %c0_i32 = arith.constant 0 : i32
    %c0_i32_0 = arith.constant 0 : i32
    return %c0_i32, %arg1 : i32, i32
  }
  func.func @transform_3(%arg0: i32, %arg1: i32) -> (i32, i32) {
    %c0_i32 = arith.constant 0 : i32
    return %arg0, %arg1 : i32, i32
  }
  func.func @transform_4(%arg0: i32, %arg1: i32) -> (i32, i32) {
    %c0_i32 = arith.constant 0 : i32
    return %arg0, %arg1 : i32, i32
  }
}

</mosaic_0001>

<bundles_post_ra>
// kernel: skip_connection.1
= control target key start
LH: loop header
LB: loop body
LE: loop exit
PB: predicated region body
PF: predicated region fallthrough
CT: control target
= control target key end

     0   :  { %s857_s15 = smov 0   ;;  %s859_s16 = smov 0   ;;  %s1017_s0 = inlined_call_operand.vmem [shape: f32[256,32], index: 0, kind: input, shape index: {}]   ;;  %s1018_s1 = inlined_call_operand.vmem [shape: f32[32,16], index: 1, kind: input, shape index: {}]   ;;  %s1019_s2 = inlined_call_operand.vmem [shape: f32[1,16], index: 2, kind: input, shape index: {}]   ;;  %s1020_s3 = inlined_call_operand.vmem [shape: f32[256,16], index: 3, kind: input, shape index: {}, may-alias: {3,4}]   ;;  %s1021_s4 = inlined_call_operand.vmem [shape: f32[256,16], index: 4, kind: output, shape index: {}, may-alias: {3,4}]  }
   0x1   :  { %s861_s17 = smov 0  }
   0x2 LB: > { %s26_s18 = sadd.s32 1, %s826_s16  ;;  %p694_p0 = scmp.ge.s32.totalorder %s830_s17, 1  ;;  %s830_s17 = sphi %s861_s17, %s14_s17   ;;  %s826_s16 = sphi %s859_s16, %s1023_s16   ;;  %s822_s15 = sphi %s857_s15, %s1022_s15  }
   0x3   : > { %p28_p1 = scmp.ge.s32.totalorder %s26_s18, 2  ;;  %p210_p2 = scmp.lt.s32.totalorder %s830_s17, 3 }
   0x5   : > { %s1025_s18 = smov (%p28_p1, %s26_s18), 0  ;;  %p211_p3 = pnand %p694_p0, %p210_p2 }
   0x6   : > { %v301_v0 = vld [vmem:[%s1018_s1] sm:$0xff] (!%p211_p3)  ;;  %v302_v1 = vld [vmem:[%s1018_s1 + $0x8] sm:$0xff] (!%p211_p3)  ;;  %v303_v2 = vld [vmem:[%s1018_s1 + $0x10] sm:$0xff] (!%p211_p3)  ;;  %s695_s25 = sshll.u32 (!%p211_p3), %s822_s15, 4  ;;  %vm312_vm0 = vcmask (!%p211_p3), 261120   ;;  %vm554_vm1 = vcmask (!%p211_p3), 130048  }
   0x7   : > { %214 = sbr.rel (%p211_p3) target bundleno = 252 (0xfc), region = 36  ;;  %v772_v3 = vpack.c.bf16 (!%p211_p3), %v302_v1, %v301_v0  ;;  %v304_v4 = vld [vmem:[%s1018_s1 + $0x18] sm:$0xff] (!%p211_p3)  ;;  %p255_p4 = scmp.lt.s32.totalorder (!%p211_p3), %s695_s25, 31  ;;  %v936_v22 = vld [vmem:[%s1019_s2] ss:$0 sm:$0xff] (!%p211_p3) }
   0x8   : > { %v776_v5 = vpack.c.bf16 (!%p211_p3), %v304_v4, %v303_v2 }
   0x9   : > { %773 = vmatprep.subr.bf16.mxu0 (!%p211_p3), %v772_v3  ;;  %780 = vmatprep.subr.bf16.mxu1 (!%p211_p3), %v772_v3 }
   0xa   : > { %775 = vmatpush3.bf16.msra.mxu0 (!%p211_p3), %v772_v3  ;;  %782 = vmatpush3.bf16.msra.mxu1 (!%p211_p3), %v772_v3 }
   0xb   : > { %777 = vmatprep.subr.bf16.mxu0 (!%p211_p3), %v776_v5  ;;  %781 = vmatprep.subr.bf16.mxu1 (!%p211_p3), %v776_v5 }
   0xe   : > { %s1027_s25 = smov (!%p255_p4, %s695_s25), 31  ;;  %779 = vmatpush3.bf16.msra.mxu0 %v776_v5  ;;  %783 = vmatpush3.bf16.msra.mxu1 %v776_v5 }
   0xf   : > { %s887_s28 = sshll.u32 %s1027_s25, 3 }
  0x10   : > { %s893_s5 = scalar_lea.vmem %s1017_s0, %s887_s28  ;;  %s931_s8 = scalar_lea.vmem %s1020_s3, %s887_s28 }
  0x11   : > { %v285_v6 = vld [vmem:[%s893_s5] sm:$0xff]  ;;  %v286_v8 = vld [vmem:[%s893_s5 + $0x8] sm:$0xff]  ;;  %v287_v10 = vld [vmem:[%s893_s5 + $0x10] sm:$0xff]  ;;  %s959_s13 = scalar_lea.vmem %s1021_s4, %s887_s28 }
  0x12   : > { %v293_v7 = vld [vmem:[%s893_s5 + $0x40] sm:$0xff]  ;;  %v294_v9 = vld [vmem:[%s893_s5 + $0x48] sm:$0xff]  ;;  %748 = vmatprep.mubr.msk.f32.mxu0 %vm312_vm0, %v285_v6  ;;  %v295_v11 = vld [vmem:[%s893_s5 + $0x50] sm:$0xff] }
  0x13   : > { %760 = vmatprep.mubr.msk.f32.mxu1 %vm312_vm0, %v293_v7  ;;  %749 = vmatmul.mubr.msk.f32.vlgmr.msra.gmra.mrb[0].mxu0 %vm312_vm0, %v286_v8  ;;  %v288_v12 = vld [vmem:[%s893_s5 + $0x18] sm:$0xff]  ;;  %v289_v14 = vld [vmem:[%s893_s5 + $0x20] sm:$0xff]  ;;  %v290_v16 = vld [vmem:[%s893_s5 + $0x28] sm:$0xff] }
  0x14   : > { %761 = vmatmul.mubr.msk.f32.vlgmr.msra.gmra.mrb[0].mxu1 %vm312_vm0, %v294_v9  ;;  %751 = vmatprep.mubr.msk.f32.mxu0 %vm312_vm0, %v287_v10  ;;  %v296_v13 = vld [vmem:[%s893_s5 + $0x58] sm:$0xff]  ;;  %v297_v15 = vld [vmem:[%s893_s5 + $0x60] sm:$0xff]  ;;  %v298_v17 = vld [vmem:[%s893_s5 + $0x68] sm:$0xff] }
  0x15   : > { %763 = vmatprep.mubr.msk.f32.mxu1 %vm312_vm0, %v295_v11  ;;  %v291_v18 = vld [vmem:[%s893_s5 + $0x30] sm:$0xff]  ;;  %v292_v20 = vld [vmem:[%s893_s5 + $0x38] sm:$0xff]  ;;  %v507_v24 = vld [vmem:[%s931_s8 + $0x8] sm:$0xff] }
  0x16   : > { %v299_v19 = vld [vmem:[%s893_s5 + $0x70] sm:$0xff]  ;;  %v300_v21 = vld [vmem:[%s893_s5 + $0x78] sm:$0xff]  ;;  %v515_v26 = vld [vmem:[%s931_s8 + $0x48] sm:$0xff] }
  0x17   : > { %752 = vmatmul.mubr.msk.f32.gmra.mrb[2].mxu0 %vm312_vm0, %v288_v12  ;;  %v506_v30 = vld [vmem:[%s931_s8] sm:$0xff]  ;;  %v509_v35 = vld [vmem:[%s931_s8 + $0x18] sm:$0xff]  ;;  %v508_v37 = vld [vmem:[%s931_s8 + $0x10] sm:$0xff] }
  0x18   : > { %764 = vmatmul.mubr.msk.f32.gmra.mrb[2].mxu1 %vm312_vm0, %v296_v13  ;;  %754 = vmatprep.mubr.msk.f32.mxu0 %vm312_vm0, %v289_v14  ;;  %v514_v32 = vld [vmem:[%s931_s8 + $0x40] sm:$0xff]  ;;  %v517_v36 = vld [vmem:[%s931_s8 + $0x58] sm:$0xff]  ;;  %v516_v38 = vld [vmem:[%s931_s8 + $0x50] sm:$0xff] }
  0x19   : > { %766 = vmatprep.mubr.msk.f32.mxu1 %vm312_vm0, %v297_v15  ;;  %v511_v39 = vld [vmem:[%s931_s8 + $0x28] sm:$0xff]  ;;  %v510_v43 = vld [vmem:[%s931_s8 + $0x20] sm:$0xff]  ;;  %v513_v45 = vld [vmem:[%s931_s8 + $0x38] sm:$0xff] }
  0x1a   : > { %v519_v40 = vld [vmem:[%s931_s8 + $0x68] sm:$0xff]  ;;  %v518_v44 = vld [vmem:[%s931_s8 + $0x60] sm:$0xff]  ;;  %v521_v50 = vld [vmem:[%s931_s8 + $0x78] sm:$0xff] }
  0x1b   : > { %755 = vmatmul.mubr.msk.f32.gmra.mrb[4].mxu0 %vm312_vm0, %v290_v16  ;;  %v512_v51 = vld [vmem:[%s931_s8 + $0x30] sm:$0xff] }
  0x1c   : > { %767 = vmatmul.mubr.msk.f32.gmra.mrb[4].mxu1 %vm312_vm0, %v298_v17  ;;  %757 = vmatprep.mubr.msk.f32.mxu0 %vm312_vm0, %v291_v18  ;;  %v520_v52 = vld [vmem:[%s931_s8 + $0x70] sm:$0xff] }
  0x1d   : > { %769 = vmatprep.mubr.msk.f32.mxu1 %vm312_vm0, %v299_v19 }
  0x1f   : > { %758 = vmatmul.mubr.msk.f32.gmra.mrb[6].mxu0 %vm312_vm0, %v292_v20 }
  0x20   : > { %770 = vmatmul.mubr.msk.f32.gmra.mrb[6].mxu1 %vm312_vm0, %v300_v21 }
  0xe6   : > { %v750_v23 = vpop.f32.mrb[0].mxu0 }
  0xe7   : > { %v762_v25 = vpop.f32.mrb[0].mxu1  ;;  %v433_v27 = vadd.f32 %v750_v23, %v936_v22  ;;  %v427_v29 = vpop.f32.mrb[1].mxu0 }
  0xe8   : > { %v473_v28 = vadd.f32 %v762_v25, %v936_v22  ;;  %v467_v31 = vpop.f32.mrb[1].mxu1  ;;  %v428_v33 = vadd.f32 %v936_v22, %v427_v29 }
  0xe9   : > { %v468_v34 = vadd.f32 %v936_v22, %v467_v31  ;;  %v523_v41 = vadd.f32 %v507_v24, %v433_v27 }
  0xea   : > { %v531_v42 = vadd.f32 %v515_v26, %v473_v28  ;;  %v522_v46 = vadd.f32 %v506_v30, %v428_v33  ;;  %v753_v48 = vpop.f32.mrb[2].mxu0 }
  0xeb   : > { %v530_v47 = vadd.f32 %v514_v32, %v468_v34  ;;  %v765_v49 = vpop.f32.mrb[2].mxu1  ;;  %v539_v53 = vmax.f32 %v523_v41, 0.0  ;;  %v443_v55 = vadd.f32 %v753_v48, %v936_v22  ;;  %v437_v57 = vpop.f32.mrb[3].mxu0 }
  0xec   : > { %v547_v54 = vmax.f32 %v531_v42, 0.0  ;;  %v483_v56 = vadd.f32 %v765_v49, %v936_v22  ;;  %v477_v58 = vpop.f32.mrb[3].mxu1  ;;  %v538_v59 = vmax.f32 %v522_v46, 0.0  ;;  %v438_v61 = vadd.f32 %v936_v22, %v437_v57 }
  0xed   : > { %v546_v60 = vmax.f32 %v530_v47, 0.0  ;;  %v478_v62 = vadd.f32 %v936_v22, %v477_v58  ;;  %v525_v63 = vadd.f32 %v509_v35, %v443_v55  ;;  %556 = vst.msk [vmem:[%s959_s13 + $0x8] sm:$0xff] %vm554_vm1, %v539_v53 }
  0xee   : > { %v533_v0 = vadd.f32 %v517_v36, %v483_v56  ;;  %564 = vst.msk [vmem:[%s959_s13 + $0x48] sm:$0xff] %vm554_vm1, %v547_v54  ;;  %v524_v1 = vadd.f32 %v508_v37, %v438_v61  ;;  %v756_v3 = vpop.f32.mrb[4].mxu0  ;;  %555 = vst.msk [vmem:[%s959_s13] sm:$0xff] %vm554_vm1, %v538_v59 }
  0xef   : > { %v532_v2 = vadd.f32 %v516_v38, %v478_v62  ;;  %v768_v4 = vpop.f32.mrb[4].mxu1  ;;  %563 = vst.msk [vmem:[%s959_s13 + $0x40] sm:$0xff] %vm554_vm1, %v546_v60  ;;  %v541_v5 = vmax.f32 %v525_v63, 0.0  ;;  %v453_v7 = vadd.f32 %v756_v3, %v936_v22  ;;  %v447_v9 = vpop.f32.mrb[5].mxu0 }
  0xf0   : > { %v549_v6 = vmax.f32 %v533_v0, 0.0  ;;  %v493_v8 = vadd.f32 %v768_v4, %v936_v22  ;;  %v487_v10 = vpop.f32.mrb[5].mxu1  ;;  %v540_v11 = vmax.f32 %v524_v1, 0.0  ;;  %v448_v13 = vadd.f32 %v936_v22, %v447_v9 }
  0xf1   : > { %v548_v12 = vmax.f32 %v532_v2, 0.0  ;;  %v488_v14 = vadd.f32 %v936_v22, %v487_v10  ;;  %v527_v15 = vadd.f32 %v511_v39, %v453_v7  ;;  %558 = vst.msk [vmem:[%s959_s13 + $0x18] sm:$0xff] %vm554_vm1, %v541_v5 }
  0xf2   : > { %v535_v16 = vadd.f32 %v519_v40, %v493_v8  ;;  %566 = vst.msk [vmem:[%s959_s13 + $0x58] sm:$0xff] %vm554_vm1, %v549_v6  ;;  %v526_v17 = vadd.f32 %v510_v43, %v448_v13  ;;  %v759_v19 = vpop.f32.mrb[6].mxu0  ;;  %557 = vst.msk [vmem:[%s959_s13 + $0x10] sm:$0xff] %vm554_vm1, %v540_v11 }
  0xf3   : > { %v534_v18 = vadd.f32 %v518_v44, %v488_v14  ;;  %v771_v20 = vpop.f32.mrb[6].mxu1  ;;  %565 = vst.msk [vmem:[%s959_s13 + $0x50] sm:$0xff] %vm554_vm1, %v548_v12  ;;  %v543_v21 = vmax.f32 %v527_v15, 0.0  ;;  %v463_v24 = vadd.f32 %v759_v19, %v936_v22  ;;  %v457_v26 = vpop.f32.mrb[7].mxu0 }
  0xf4   : > { %v551_v23 = vmax.f32 %v535_v16, 0.0  ;;  %v503_v25 = vadd.f32 %v771_v20, %v936_v22  ;;  %v497_v27 = vpop.f32.mrb[7].mxu1  ;;  %v542_v28 = vmax.f32 %v526_v17, 0.0  ;;  %v458_v30 = vadd.f32 %v936_v22, %v457_v26 }
  0xf5   : > { %v550_v29 = vmax.f32 %v534_v18, 0.0  ;;  %v498_v31 = vadd.f32 %v936_v22, %v497_v27  ;;  %v529_v32 = vadd.f32 %v513_v45, %v463_v24  ;;  %560 = vst.msk [vmem:[%s959_s13 + $0x28] sm:$0xff] %vm554_vm1, %v543_v21 }
  0xf6   : > { %v537_v33 = vadd.f32 %v521_v50, %v503_v25  ;;  %568 = vst.msk [vmem:[%s959_s13 + $0x68] sm:$0xff] %vm554_vm1, %v551_v23  ;;  %v528_v34 = vadd.f32 %v512_v51, %v458_v30  ;;  %559 = vst.msk [vmem:[%s959_s13 + $0x20] sm:$0xff] %vm554_vm1, %v542_v28 }
  0xf7   : > { %v536_v35 = vadd.f32 %v520_v52, %v498_v31  ;;  %567 = vst.msk [vmem:[%s959_s13 + $0x60] sm:$0xff] %vm554_vm1, %v550_v29  ;;  %v545_v36 = vmax.f32 %v529_v32, 0.0 }
  0xf8   : > { %v553_v37 = vmax.f32 %v537_v33, 0.0  ;;  %v544_v38 = vmax.f32 %v528_v34, 0.0 }
  0xf9   : > { %v552_v39 = vmax.f32 %v536_v35, 0.0  ;;  %562 = vst.msk [vmem:[%s959_s13 + $0x38] sm:$0xff] %vm554_vm1, %v545_v36 }
  0xfa   : > { %570 = vst.msk [vmem:[%s959_s13 + $0x78] sm:$0xff] %vm554_vm1, %v553_v37  ;;  %561 = vst.msk [vmem:[%s959_s13 + $0x30] sm:$0xff] %vm554_vm1, %v544_v38 }
  0xfb   : > { %569 = vst.msk [vmem:[%s959_s13 + $0x70] sm:$0xff] %vm554_vm1, %v552_v39 }
  0xfc PF: > { %s14_s17 = sadd.s32 1, %s830_s17   ;;  %s1022_s15 = smov %s826_s16 }
  0xfd   : > { %p11_p5 = scmp.ge.s32.totalorder %s14_s17, 4   ;;  %s1023_s16 = smov %s1025_s18 }
  0xff   :  { %13 = sbr.rel (!%p11_p5) target bundleno = 2 (0x2), region = 75 }

</bundles_post_ra>
